<compile_context>
chip_gen: v7x
topology: tpu7x:2x2x1
jax: 0.10.0
libtpu: 0.0.40
codegen_flags: <defaults>
</compile_context>

<pallas_src>
import numpy as np
import jax
import jax.numpy as jnp
from jax import lax
from jax.experimental import pallas as pl
from jax.experimental.pallas import tpu as pltpu

MATMUL_DTYPE = jnp.bfloat16          # MXU operand dtype; accumulation stays f32
_VMEM_LIMIT = 64 * 1024 * 1024       # explicit cap (fits v5e/v6e/v7x)
_TILE_TARGET_ROWS = 512              # ~85% of HBM roofline per measured tiling data


def _choose_tile(m, target=_TILE_TARGET_ROWS):
    """Largest row tile <= target that divides m and is a multiple of 8 (else m)."""
    if m <= target:
        return m
    for t in range(target, 7, -1):
        if m % t == 0 and t % 8 == 0:
            return t
    return m


# ---------------------------------------------------------------------------
# Pallas kernels
# ---------------------------------------------------------------------------
def _down_kernel(a_ref, w_ref, b_ref, y_ref):
    # y = ReLU(A @ W + b)  -- the up-path ReLU is fused into this epilogue.
    acc = jnp.dot(a_ref[...], w_ref[...], preferred_element_type=jnp.float32)
    acc = jnp.maximum(acc + b_ref[...], 0.0)
    y_ref[...] = acc.astype(y_ref.dtype)


def _up_kernel(a_ref, w_ref, b_ref, z_ref, s_ref):
    # z = A @ W + b (phase-packed 4*outer columns); also emit per-tile
    # (sum, sum-of-squares) so BatchNorm needs no extra pass over z.
    z = jnp.dot(a_ref[...], w_ref[...], preferred_element_type=jnp.float32)
    z = z + b_ref[...]
    z_ref[...] = z
    s_sum = jnp.sum(z, axis=0, keepdims=True)        # (1, 4*outer)
    s_sq = jnp.sum(z * z, axis=0, keepdims=True)     # (1, 4*outer)
    s_ref[...] = jnp.concatenate([s_sum, s_sq], axis=0).reshape(1, 2, z.shape[1])


def _norm_kernel(z_ref, sc_ref, sh_ref, o_ref):
    o_ref[...] = z_ref[...] * sc_ref[...] + sh_ref[...]


# ---------------------------------------------------------------------------
# pallas_call wrappers
# ---------------------------------------------------------------------------
def _matmul_bias_relu(a, w, b, out_dtype):
    M, K = a.shape
    C = w.shape[1]
    tm = _choose_tile(M)
    return pl.pallas_call(
        _down_kernel,
        out_shape=jax.ShapeDtypeStruct((M, C), out_dtype),
        grid=(M // tm,),
        in_specs=[
            pl.BlockSpec((tm, K), lambda m: (m, 0)),
            pl.BlockSpec((K, C), lambda m: (0, 0)),
            pl.BlockSpec((1, C), lambda m: (0, 0)),
        ],
        out_specs=pl.BlockSpec((tm, C), lambda m: (m, 0)),
        compiler_params=pltpu.CompilerParams(
            dimension_semantics=("parallel",),
            vmem_limit_bytes=_VMEM_LIMIT),
    )(a, w, b)


def _matmul_bias_stats(a, w, b):
    M, K = a.shape
    C = w.shape[1]
    tm = _choose_tile(M)
    g = M // tm
    return pl.pallas_call(
        _up_kernel,
        out_shape=(jax.ShapeDtypeStruct((M, C), jnp.float32),
                   jax.ShapeDtypeStruct((g, 2, C), jnp.float32)),
        grid=(g,),
        in_specs=[
            pl.BlockSpec((tm, K), lambda m: (m, 0)),
            pl.BlockSpec((K, C), lambda m: (0, 0)),
            pl.BlockSpec((1, C), lambda m: (0, 0)),
        ],
        out_specs=(pl.BlockSpec((tm, C), lambda m: (m, 0)),
                   pl.BlockSpec((1, 2, C), lambda m: (m, 0, 0))),
        compiler_params=pltpu.CompilerParams(
            dimension_semantics=("parallel",),
            vmem_limit_bytes=_VMEM_LIMIT),
    )(a, w, b)


def _normalize(z, scale, shift):
    M, C = z.shape
    tm = _choose_tile(M)
    return pl.pallas_call(
        _norm_kernel,
        out_shape=jax.ShapeDtypeStruct((M, C), jnp.float32),
        grid=(M // tm,),
        in_specs=[
            pl.BlockSpec((tm, C), lambda m: (m, 0)),
            pl.BlockSpec((1, C), lambda m: (0, 0)),
            pl.BlockSpec((1, C), lambda m: (0, 0)),
        ],
        out_specs=pl.BlockSpec((tm, C), lambda m: (m, 0)),
        compiler_params=pltpu.CompilerParams(
            dimension_semantics=("parallel",),
            vmem_limit_bytes=_VMEM_LIMIT),
    )(z, scale, shift)


# ---------------------------------------------------------------------------
# JAX-side layout glue (im2col fold, sub-pixel weights, depth-to-space, concat)
# ---------------------------------------------------------------------------
def _im2col_down(x_act, OH, OW):
    """(N,H,W,Cin) activated input -> (N*OH*OW, 16*Cin), columns ordered (kh,kw,cin)."""
    N, H, W, Cin = x_act.shape
    xp = jnp.pad(x_act, ((0, 0), (1, 1), (1, 1), (0, 0)))
    cols = []
    for kh in range(4):
        for kw in range(4):
            cols.append(xp[:, kh:kh + 2 * OH:2, kw:kw + 2 * OW:2, :])
    patches = jnp.concatenate(cols, axis=-1)               # (N, OH, OW, 16*Cin)
    return patches.reshape(N * OH * OW, 16 * Cin)


def _im2col_up(y, OH, OW):
    """(N,OH,OW,inner) -> (N*OH*OW, 9*inner): the 3x3 neighbourhood of padded y."""
    N, _, _, Ci = y.shape
    yp = jnp.pad(y, ((0, 0), (1, 1), (1, 1), (0, 0)))
    cols = []
    for tr in range(3):
        for tc in range(3):
            cols.append(yp[:, tr:tr + OH, tc:tc + OW, :])
    patches = jnp.concatenate(cols, axis=-1)               # (N, OH, OW, 9*inner)
    return patches.reshape(N * OH * OW, 9 * Ci)
    # TODO(synk): gather these taps in-kernel with halo DMAs (pl.ANY +
    # make_async_copy) so the im2col duplication never hits HBM.


def _prep_down_weight(Wd):
    """Conv2d weight (inner, Cin, 4, 4) -> (16*Cin, inner), rows ordered (kh,kw,cin)."""
    inner, Cin = Wd.shape[0], Wd.shape[1]
    return jnp.transpose(Wd, (2, 3, 1, 0)).reshape(16 * Cin, inner)


# (output parity d, tap offset t in the 3x3 window) -> ConvTranspose kernel index.
# Derived from k = (2a+d) - 2i + 1 with i = a + t - 1  =>  k = d - 2t + 3.
_K_TAB = {(0, 0): 3, (0, 1): 1, (1, 1): 2, (1, 2): 0}


def _prep_up_weight(Wu):
    """ConvTranspose2d weight (inner, outer, 4, 4) -> sub-pixel weight (9*inner, 4*outer).

    Rows ordered (tap_row, tap_col, cin); columns ordered (di, dj, cout).
    Entries not reachable by a given parity are structurally zero.
    """
    inner, outer = Wu.shape[0], Wu.shape[1]
    Wc = jnp.zeros((3, 3, inner, 2, 2, outer), jnp.float32)
    for (di, tr), kh in _K_TAB.items():
        for (dj, tc), kw in _K_TAB.items():
            Wc = Wc.at[tr, tc, :, di, dj, :].set(Wu[:, :, kh, kw])
    return Wc.reshape(9 * inner, 4 * outer)


def make_params(key, input_nc, inner_nc, outer_nc):
    k1, k2, k3, k4 = jax.random.split(key, 4)
    # PyTorch layouts: Conv2d (out,in,kh,kw); ConvTranspose2d (in,out,kh,kw)
    Wd = 0.1 * jax.random.normal(k1, (inner_nc, input_nc, 4, 4), jnp.float32)
    bd = 0.1 * jax.random.normal(k2, (inner_nc,), jnp.float32)
    Wu = 0.1 * jax.random.normal(k3, (inner_nc, outer_nc, 4, 4), jnp.float32)
    bu = 0.1 * jax.random.normal(k4, (outer_nc,), jnp.float32)
    gamma = jnp.ones((outer_nc,), jnp.float32)
    beta = jnp.zeros((outer_nc,), jnp.float32)
    return Wd, bd, Wu, bu, gamma, beta


def unet_innermost_forward(x_nchw, params):
    Wd, bd, Wu, bu, gamma, beta = params
    inner_nc = Wd.shape[0]
    outer_nc = Wu.shape[1]

    x = jnp.transpose(x_nchw, (0, 2, 3, 1)).astype(jnp.float32)     # NHWC
    N, H, W, Cin = x.shape
    OH, OW = H // 2, W // 2
    M = N * OH * OW

    # --- down: LeakyReLU(0.2) + Conv2d(k4,s2,p1) + bias, with the up-path ReLU
    #     fused into the kernel epilogue.  One (M, 16*Cin)@(16*Cin, inner) matmul.
    x_act = jnp.where(x >= 0, x, 0.2 * x).astype(MATMUL_DTYPE)
    a_down = _im2col_down(x_act, OH, OW)                             # (M, 16*Cin) bf16
    w_down = _prep_down_weight(Wd).astype(MATMUL_DTYPE)
    b_down = bd.reshape(1, inner_nc).astype(jnp.float32)
    y = _matmul_bias_relu(a_down, w_down, b_down, out_dtype=MATMUL_DTYPE)
    y = y.reshape(N, OH, OW, inner_nc)                               # ReLU(y), bf16

    # --- up: ConvTranspose2d(k4,s2,p1) via sub-pixel decomposition.
    #     One (M, 9*inner)@(9*inner, 4*outer) matmul yields all 4 output parities
    #     ("phase-packed"); per-tile BN partial sums come out of the same kernel.
    a_up = _im2col_up(y, OH, OW)                                     # (M, 9*inner) bf16
    w_up = _prep_up_weight(Wu).astype(MATMUL_DTYPE)
    b_up = jnp.tile(bu, 4).reshape(1, 4 * outer_nc).astype(jnp.float32)
    z_packed, stats = _matmul_bias_stats(a_up, w_up, b_up)           # (M,4*outer) f32

    # --- BatchNorm2d (training-mode batch stats), folded into scale/shift.
    cnt = float(M * 4)                                               # = N*H*W
    tot = jnp.sum(stats, axis=0)                                     # (2, 4*outer)
    s1 = tot[0].reshape(4, outer_nc).sum(axis=0)
    s2 = tot[1].reshape(4, outer_nc).sum(axis=0)
    mean = s1 / cnt
    var = s2 / cnt - mean * mean                                     # biased (training)
    inv = lax.rsqrt(var + 1e-5)
    scale = gamma * inv
    shift = beta - mean * scale
    scale_p = jnp.tile(scale, 4).reshape(1, 4 * outer_nc)
    shift_p = jnp.tile(shift, 4).reshape(1, 4 * outer_nc)
    z_packed = _normalize(z_packed, scale_p, shift_p)                # (M, 4*outer) f32

    # --- depth-to-space (interleave the 4 parities) + skip concat, back to NCHW.
    z = z_packed.reshape(N, OH, OW, 2, 2, outer_nc)
    z = jnp.transpose(z, (0, 1, 3, 2, 4, 5)).reshape(N, H, W, outer_nc)
    out = jnp.concatenate([x, z], axis=-1)
    # TODO(synk): fuse the skip-concat / NCHW repack into the normalize kernel's
    # output BlockSpec (write z into channels [Cin:] of a pre-built NHWC buffer)
    # to remove the extra HBM round trip XLA performs for the concat.
    return jnp.transpose(out, (0, 3, 1, 2))                          # NCHW


# ---------------------------------------------------------------------------
# Reference (same bf16 matmul-operand policy, f32 everywhere else)
# ---------------------------------------------------------------------------
def reference_forward(x_nchw, params):
    Wd, bd, Wu, bu, gamma, beta = params
    x = x_nchw.astype(jnp.float32)
    h = jnp.where(x >= 0, x, 0.2 * x)
    y = lax.conv_general_dilated(
        h.astype(MATMUL_DTYPE), Wd.astype(MATMUL_DTYPE), (2, 2), ((1, 1), (1, 1)),
        dimension_numbers=("NCHW", "OIHW", "NCHW"),
        preferred_element_type=jnp.float32)
    y = jnp.maximum(y + bd[None, :, None, None], 0.0)
    Wup = jnp.transpose(Wu[:, :, ::-1, ::-1], (1, 0, 2, 3))          # OIHW, flipped
    z = lax.conv_general_dilated(
        y.astype(MATMUL_DTYPE), Wup.astype(MATMUL_DTYPE), (1, 1), ((2, 2), (2, 2)),
        lhs_dilation=(2, 2),
        dimension_numbers=("NCHW", "OIHW", "NCHW"),
        preferred_element_type=jnp.float32)
    z = z + bu[None, :, None, None]
    m = jnp.mean(z, axis=(0, 2, 3), keepdims=True)
    v = jnp.mean((z - m) ** 2, axis=(0, 2, 3), keepdims=True)
    z = (z - m) * lax.rsqrt(v + 1e-5)
    z = z * gamma[None, :, None, None] + beta[None, :, None, None]
    return jnp.concatenate([x, z], axis=1)


# ---------------------------------------------------------------------------
if __name__ == "__main__":
    # Small shapes: batch=2, outer_nc=input_nc=4, inner_nc=8, spatial=16x16.
    N, outer_nc, inner_nc, H, W = 2, 4, 8, 16, 16
    input_nc = outer_nc                      # input_nc=None -> outer_nc in the module

    key = jax.random.PRNGKey(0)
    kx, kp = jax.random.split(key)
    x = jax.random.normal(kx, (N, input_nc, H, W), jnp.float32)
    params = make_params(kp, input_nc, inner_nc, outer_nc)

    out = jax.block_until_ready(unet_innermost_forward(x, params))
    ref = jax.block_until_ready(reference_forward(x, params))

    assert out.shape == (N, input_nc + outer_nc, H, W), out.shape
    np.testing.assert_allclose(np.asarray(out), np.asarray(ref), rtol=2e-2, atol=2e-2)

    # TODO(synk): outermost/middle recursive configurations (submodule chaining,
    # Dropout, Tanh) are module-composition glue, not exercised by the innermost block.
    print("KERNEL_OK")
</pallas_src>

<mosaic_0001>
module attributes {stable_mosaic.version = 11 : i64} {
  func.func @_down_kernel(%arg0: i32, %arg1: memref<128x64xbf16, #tpu.memory_space<vmem>>, %arg2: memref<64x8xbf16, #tpu.memory_space<vmem>>, %arg3: memref<1x8xf32, #tpu.memory_space<vmem>>, %arg4: memref<128x8xbf16, #tpu.memory_space<vmem>>) attributes {dimension_semantics = [#tpu.dimension_semantics<parallel>], iteration_bounds = array<i64: 1>, scalar_prefetch = 0 : i64, scratch_operands = 0 : i64, tpu.core_type = #tpu.core_type<tc>, window_params = [{transform_indices = @transform_0, window_bounds = array<i64: 128, 64>}, {pipeline_mode = #tpu.pipeline_mode<synchronous>, transform_indices = @transform_1, window_bounds = array<i64: 64, 8>}, {pipeline_mode = #tpu.pipeline_mode<synchronous>, transform_indices = @transform_2, window_bounds = array<i64: 1, 8>}, {transform_indices = @transform_3, window_bounds = array<i64: 128, 8>}]} {
    %c0 = arith.constant 0 : index
    %c0_0 = arith.constant 0 : index
    %0 = vector.load %arg1[%c0, %c0_0] : memref<128x64xbf16, #tpu.memory_space<vmem>>, vector<128x64xbf16>
    %c0_1 = arith.constant 0 : index
    %c0_2 = arith.constant 0 : index
    %1 = vector.load %arg2[%c0_1, %c0_2] : memref<64x8xbf16, #tpu.memory_space<vmem>>, vector<64x8xbf16>
    %cst = arith.constant dense<0.000000e+00> : vector<128x8xf32>
    %2 = tpu.matmul %0, %1, %cst {dimension_numbers = #tpu.dot_dimension_numbers<[1], [0], [0], [1], [0, 0, 1, 1], [], []>} : vector<128x64xbf16>, vector<64x8xbf16>, vector<128x8xf32> -> vector<128x8xf32>
    %c0_3 = arith.constant 0 : index
    %c0_4 = arith.constant 0 : index
    %3 = vector.load %arg3[%c0_3, %c0_4] : memref<1x8xf32, #tpu.memory_space<vmem>>, vector<1x8xf32>
    %4 = vector.broadcast %3 : vector<1x8xf32> to vector<128x8xf32>
    %5 = arith.addf %2, %4 : vector<128x8xf32>
    %cst_5 = arith.constant 0.000000e+00 : f32
    %6 = vector.broadcast %cst_5 : f32 to vector<128x8xf32>
    %7 = arith.maximumf %5, %6 : vector<128x8xf32>
    %8 = arith.truncf %7 : vector<128x8xf32> to vector<128x8xbf16>
    %c0_6 = arith.constant 0 : index
    %c0_7 = arith.constant 0 : index
    %9 = vector.load %arg4[%c0_6, %c0_7] : memref<128x8xbf16, #tpu.memory_space<vmem>>, vector<128x8xbf16>
    tpu.vector_store %arg4[%c0_6, %c0_7], %8 {strides = array<i32>} : memref<128x8xbf16, #tpu.memory_space<vmem>>, vector<128x8xbf16>,
    return
  }
  func.func @transform_0(%arg0: i32) -> (i32, i32) {
    %c0_i32 = arith.constant 0 : i32
    %c0_i32_0 = arith.constant 0 : i32
    return %arg0, %c0_i32 : i32, i32
  }
  func.func @transform_1(%arg0: i32) -> (i32, i32) {
    %c0_i32 = arith.constant 0 : i32
    %c0_i32_0 = arith.constant 0 : i32
    %c0_i32_1 = arith.constant 0 : i32
    return %c0_i32, %c0_i32_0 : i32, i32
  }
  func.func @transform_2(%arg0: i32) -> (i32, i32) {
    %c0_i32 = arith.constant 0 : i32
    %c0_i32_0 = arith.constant 0 : i32
    %c0_i32_1 = arith.constant 0 : i32
    return %c0_i32, %c0_i32_0 : i32, i32
  }
  func.func @transform_3(%arg0: i32) -> (i32, i32) {
    %c0_i32 = arith.constant 0 : i32
    %c0_i32_0 = arith.constant 0 : i32
    return %arg0, %c0_i32 : i32, i32
  }
}

</mosaic_0001>

<bundles_post_ra>
// kernel: tpu_custom_call.1
= control target key start
LH: loop header
LB: loop body
LE: loop exit
PB: predicated region body
PF: predicated region fallthrough
CT: control target
= control target key end

     0   :  { %8 = vsyncpa [#allocation3], 0  ;;  %s710_s0 = inlined_call_operand.hbm [shape: bf16[128,64], index: 0, kind: input, shape index: {}]   ;;  %s711_s1 = inlined_call_operand.hbm [shape: bf16[64,8], index: 1, kind: input, shape index: {}]   ;;  %s712_s2 = inlined_call_operand.hbm [shape: f32[1,8], index: 2, kind: input, shape index: {}]   ;;  %s713_s3 = inlined_call_operand.hbm [shape: bf16[128,8], index: 3, kind: output, shape index: {}]  }
   0x1   :  { %9 = vsyncpa [#allocation6], 0 }
   0x2   :  { %10 = vsyncpa [#allocation4], 0  ;;  %s596_s12 = smov [#allocation5]   ;;  %s597_s14 = smov [#allocation2]  }
   0x3   :  { %s28_s13 = sshll.u32 %s596_s12, 4  ;;  %s16_s15 = sshll.u32 %s597_s14, 4  ;;  %s29_s13 = int_to_ptr.vmem [resolvable:$true] %s28_s13  ;;  %s622_s15 = int_to_ptr.vmem [resolvable:$true] %s16_s15 }
   0x4   :  { %s502_s18 = scalar_lea.hbm %s711_s1, 512 }
   0x5   :  { %p503_p0 = scmp.ne.s32.totalorder %s711_s1, %s502_s18  ;;  %p506_p1 = scmp.lt.u32.totalorder %s502_s18, %s711_s1 }
   0x7   :  { %p508_p2 = pnand %p506_p1, %p503_p0 }
   0x9   :  { %511 = shalt.err (!%p508_p2)
}
   0xa   :  { %s512_s23 = scalar_lea.vmem %s29_s13, 512  ;;  %p517_p4 = scmp.lt.s32.totalorder %s29_s13, %s29_s13 }
   0xb   :  { %p513_p3 = scmp.ne.s32.totalorder %s29_s13, %s512_s23  ;;  %p518_p5 = scmp.lt.s32.totalorder %s512_s23, %s512_s23 }
   0xd   :  { %p519_p6 = por %p518_p5, %p517_p4 }
   0xf   :  { %p520_p7 = pnand %p519_p6, %p513_p3 }
  0x11   :  { %523 = shalt.err (!%p520_p7)
}
  0x12   :  { %s598_s24 = smov 64   ;;  %s599_s25 = smov 4  }
  0x13   :  { %34 = dma.hbm_to_vmem [thread:$0]  %s711_s1, 512, %s29_s13, [#allocation6], %s598_s24, %s598_s24, %s599_s25  }
  0x14   :  { %s524_s30 = scalar_lea.hbm %s710_s0, 1024 }
  0x15   :  { %p525_p8 = scmp.ne.s32.totalorder %s710_s0, %s524_s30  ;;  %p528_p9 = scmp.lt.u32.totalorder %s524_s30, %s710_s0 }
  0x17   :  { %p530_p10 = pnand %p528_p9, %p525_p8 }
  0x19   :  { %533 = shalt.err (!%p530_p10)
}
  0x1a   :  { %s534_s8 = scalar_lea.vmem %s622_s15, 1024  ;;  %p539_p12 = scmp.lt.s32.totalorder %s622_s15, %s622_s15 }
  0x1b   :  { %p535_p11 = scmp.ne.s32.totalorder %s622_s15, %s534_s8  ;;  %p540_p13 = scmp.lt.s32.totalorder %s534_s8, %s534_s8 }
  0x1d   :  { %p541_p0 = por %p540_p13, %p539_p12 }
  0x1f   :  { %p542_p1 = pnand %p541_p0, %p535_p11 }
  0x21   :  { %545 = shalt.err (!%p542_p1)
}
  0x22   :  { %22 = dma.hbm_to_vmem [thread:$0]  %s710_s0, 1024, %s622_s15, [#allocation3], %s598_s24, %s598_s24, %s599_s25  }
  0x23   :  { %s600_s10 = smov [#allocation7]   ;;  %s546_s14 = scalar_lea.hbm %s712_s2, 16 }
  0x24   :  { %s41_s11 = sshll.u32 %s600_s10, 4  ;;  %p547_p2 = scmp.ne.s32.totalorder %s712_s2, %s546_s14  ;;  %s42_s11 = int_to_ptr.vmem [resolvable:$true] %s41_s11 }
  0x25   :  { %p550_p3 = scmp.lt.u32.totalorder %s546_s14, %s712_s2 }
  0x27   :  { %p552_p4 = pnand %p550_p3, %p547_p2 }
  0x29   :  { %555 = shalt.err (!%p552_p4)
}
  0x2a   :  { %s556_s20 = scalar_lea.vmem %s42_s11, 16  ;;  %s560_s0 = scalar_lea.vmem %s42_s11, 32 }
  0x2b   :  { %p557_p5 = scmp.ne.s32.totalorder %s42_s11, %s556_s20  ;;  %p561_p6 = scmp.lt.s32.totalorder %s42_s11, %s42_s11 }
  0x2c   :  { %p562_p7 = scmp.lt.s32.totalorder %s560_s0, %s556_s20 }
  0x2e   :  { %p563_p8 = por %p562_p7, %p561_p6 }
  0x30   :  { %p564_p9 = pnand %p563_p8, %p557_p5 }
  0x32   :  { %567 = shalt.err (!%p564_p9)
}
  0x33   :  { %44 = dma.hbm_to_vmem [thread:$0]  %s712_s2, 16, %s42_s11, [#allocation6]  }
  0x34   :  { %590 = dma.done.wait [#allocation3], 1024  }
  0x35   :  { %591 = vsyncadd [#allocation3], 4294966272 }
  0x36   :  { %592 = dma.done.wait [#allocation6], 528  }
  0x37   :  { %593 = vsyncadd [#allocation6], 4294966768  ;;  %v490_v0 = vld [vmem:[#allocation5] sm:$0xff]   ;;  %v491_v1 = vld [vmem:[#allocation5 + $0x8] sm:$0xff]   ;;  %vm150_vm0 = vcmask 523264   ;;  %vm352_vm1 = vcmask 60416  }
  0x38   :  { %452 = vmatprep.subr.bf16.mxu0 %v490_v0  ;;  %476 = vmatprep.subr.bf16.mxu1 %v490_v0  ;;  %v492_v2 = vld [vmem:[#allocation5 + $0x10] sm:$0xff]   ;;  %v494_v3 = vld [vmem:[#allocation2] sm:$0xff]   ;;  %v493_v5 = vld [vmem:[#allocation5 + $0x18] sm:$0xff]   ;;  %s601_s2 = smov [#allocation8]  }
  0x39   :  { %453 = vmatpush3.bf16.msra.mxu0 %v490_v0  ;;  %480 = vmatpush3.bf16.msra.mxu1 %v490_v0  ;;  %v495_v4 = vld [vmem:[#allocation2 + $0x20] sm:$0xff]   ;;  %v496_v6 = vld [vmem:[#allocation2 + $0x8] sm:$0xff]   ;;  %v498_v8 = vld [vmem:[#allocation2 + $0x10] sm:$0xff]   ;;  %s374_s22 = sshll.u32 %s601_s2, 4  ;;  %s375_s22 = int_to_ptr.vmem [resolvable:$true] %s374_s22 }
  0x3a   :  { %454 = vmatprep.subr.bf16.mxu0 %v491_v1  ;;  %477 = vmatprep.subr.bf16.mxu1 %v491_v1  ;;  %v497_v7 = vld [vmem:[#allocation2 + $0x28] sm:$0xff]   ;;  %v499_v9 = vld [vmem:[#allocation2 + $0x30] sm:$0xff]   ;;  %v500_v10 = vld [vmem:[#allocation2 + $0x18] sm:$0xff]   ;;  %s568_s23 = scalar_lea.vmem %s375_s22, 1024  ;;  %p573_p11 = scmp.lt.s32.totalorder %s375_s22, %s375_s22 }
  0x3b   :  { %460 = vmatprep.mubr.msk.bf16.mxu0 %vm150_vm0, %v494_v3  ;;  %468 = vmatprep.mubr.msk.bf16.mxu1 %vm150_vm0, %v495_v4  ;;  %v501_v11 = vld [vmem:[#allocation2 + $0x38] sm:$0xff]   ;;  %v387_v12 = vld [vmem:[#allocation7] ss:$0 sm:$0xff]  ;;  %p569_p10 = scmp.ne.s32.totalorder %s375_s22, %s568_s23  ;;  %p574_p12 = scmp.lt.s32.totalorder %s568_s23, %s568_s23 }
  0x3d   :  { %455 = vmatpush3.bf16.msra.mxu0 %v491_v1  ;;  %481 = vmatpush3.bf16.msra.mxu1 %v491_v1  ;;  %p575_p13 = por %p574_p12, %p573_p11 }
  0x3e   :  { %456 = vmatprep.subr.bf16.mxu0 %v492_v2  ;;  %478 = vmatprep.subr.bf16.mxu1 %v492_v2 }
  0x3f   :  { %p576_p0 = pnand %p575_p13, %p569_p10 }
  0x41   :  { %457 = vmatpush3.bf16.msra.mxu0 %v492_v2  ;;  %482 = vmatpush3.bf16.msra.mxu1 %v492_v2 }
  0x42   :  { %458 = vmatprep.subr.bf16.mxu0 %v493_v5  ;;  %479 = vmatprep.subr.bf16.mxu1 %v493_v5 }
  0x45   :  { %459 = vmatpush3.bf16.msra.mxu0 %v493_v5  ;;  %483 = vmatpush3.bf16.msra.mxu1 %v493_v5 }
  0x48   :  { %461 = vmatmul.mubr.msk.bf16.vlgmr.msra.gmra.mrb[0].mxu0 %vm150_vm0, %v496_v6  ;;  %469 = vmatmul.mubr.msk.bf16.vlgmr.msra.gmra.mrb[0].mxu1 %vm150_vm0, %v497_v7 }
  0x49   :  { %464 = vmatprep.mubr.msk.bf16.mxu0 %vm150_vm0, %v498_v8  ;;  %472 = vmatprep.mubr.msk.bf16.mxu1 %vm150_vm0, %v499_v9 }
  0x50   :  { %465 = vmatmul.mubr.msk.bf16.gmra.mrb[4].mxu0 %vm150_vm0, %v500_v10  ;;  %473 = vmatmul.mubr.msk.bf16.gmra.mrb[4].mxu1 %vm150_vm0, %v501_v11 }
 0x11b   :  { %v462_v13 = vpop.f32.mrb[0].mxu0  ;;  %v470_v14 = vpop.f32.mrb[0].mxu1 }
 0x11c   :  { %v218_v15 = vadd.f32 %v462_v13, %v387_v12  ;;  %v250_v16 = vadd.f32 %v470_v14, %v387_v12  ;;  %v209_v17 = vpop.f32.mrb[1].mxu0  ;;  %v241_v18 = vpop.f32.mrb[1].mxu1 }
 0x11d   :  { %v210_v19 = vadd.f32 %v387_v12, %v209_v17  ;;  %v242_v20 = vadd.f32 %v387_v12, %v241_v18  ;;  %v463_v21 = vpop.f32.mrb[2].mxu0  ;;  %v471_v22 = vpop.f32.mrb[2].mxu1 }
 0x11e   :  { %v274_v23 = vmax.f32 %v218_v15, 0.0  ;;  %v282_v24 = vmax.f32 %v250_v16, 0.0  ;;  %v221_v25 = vadd.f32 %v463_v21, %v387_v12  ;;  %v253_v26 = vadd.f32 %v471_v22, %v387_v12  ;;  %v212_v27 = vpop.f32.mrb[3].mxu0  ;;  %v244_v28 = vpop.f32.mrb[3].mxu1 }
 0x11f   :  { %v272_v29 = vmax.f32 %v210_v19, 0.0  ;;  %v280_v30 = vmax.f32 %v242_v20, 0.0  ;;  %v213_v31 = vadd.f32 %v387_v12, %v212_v27  ;;  %v245_v32 = vadd.f32 %v387_v12, %v244_v28 }
 0x120   :  { %v426_v33 = vpack.c.bf16 %v274_v23, %v274_v23  ;;  %v434_v34 = vpack.c.bf16 %v282_v24, %v282_v24  ;;  %v275_v35 = vmax.f32 %v221_v25, 0.0  ;;  %v283_v36 = vmax.f32 %v253_v26, 0.0 }
 0x121   :  { %v424_v37 = vpack.c.bf16 %v272_v29, %v272_v29  ;;  %v432_v38 = vpack.c.bf16 %v280_v30, %v280_v30  ;;  %v273_v39 = vmax.f32 %v213_v31, 0.0  ;;  %v281_v40 = vmax.f32 %v245_v32, 0.0 }
 0x122   :  { %355 = vst.msk [vmem:[#allocation8 + $0x8] sm:$0xf] %vm352_vm1, %v426_v33  ;;  %363 = vst.msk [vmem:[#allocation8 + $0x28] sm:$0xf] %vm352_vm1, %v434_v34  ;;  %v427_v41 = vpack.c.bf16 %v275_v35, %v275_v35  ;;  %v435_v42 = vpack.c.bf16 %v283_v36, %v283_v36 }
 0x123   :  { %353 = vst.msk [vmem:[#allocation8] sm:$0xf] %vm352_vm1, %v424_v37  ;;  %361 = vst.msk [vmem:[#allocation8 + $0x20] sm:$0xf] %vm352_vm1, %v432_v38  ;;  %v425_v43 = vpack.c.bf16 %v273_v39, %v273_v39  ;;  %v433_v44 = vpack.c.bf16 %v281_v40, %v281_v40  ;;  %v466_v45 = vpop.f32.mrb[4].mxu0  ;;  %v474_v46 = vpop.f32.mrb[4].mxu1 }
 0x124   :  { %356 = vst.msk [vmem:[#allocation8 + $0xc] sm:$0xf] %vm352_vm1, %v427_v41  ;;  %364 = vst.msk [vmem:[#allocation8 + $0x2c] sm:$0xf] %vm352_vm1, %v435_v42  ;;  %v234_v47 = vadd.f32 %v466_v45, %v387_v12  ;;  %v266_v48 = vadd.f32 %v474_v46, %v387_v12  ;;  %v225_v49 = vpop.f32.mrb[5].mxu0  ;;  %v257_v50 = vpop.f32.mrb[5].mxu1 }
 0x125   :  { %354 = vst.msk [vmem:[#allocation8 + $0x4] sm:$0xf] %vm352_vm1, %v425_v43  ;;  %362 = vst.msk [vmem:[#allocation8 + $0x24] sm:$0xf] %vm352_vm1, %v433_v44  ;;  %v226_v51 = vadd.f32 %v387_v12, %v225_v49  ;;  %v258_v52 = vadd.f32 %v387_v12, %v257_v50  ;;  %v467_v53 = vpop.f32.mrb[6].mxu0  ;;  %v475_v54 = vpop.f32.mrb[6].mxu1 }
 0x126   :  { %v278_v55 = vmax.f32 %v234_v47, 0.0  ;;  %v286_v56 = vmax.f32 %v266_v48, 0.0  ;;  %v237_v57 = vadd.f32 %v467_v53, %v387_v12  ;;  %v269_v58 = vadd.f32 %v475_v54, %v387_v12  ;;  %v228_v59 = vpop.f32.mrb[7].mxu0  ;;  %v260_v60 = vpop.f32.mrb[7].mxu1 }
 0x127   :  { %v276_v61 = vmax.f32 %v226_v51, 0.0  ;;  %v284_v62 = vmax.f32 %v258_v52, 0.0  ;;  %v229_v63 = vadd.f32 %v387_v12, %v228_v59  ;;  %v261_v0 = vadd.f32 %v387_v12, %v260_v60 }
 0x128   :  { %v430_v1 = vpack.c.bf16 %v278_v55, %v278_v55  ;;  %v438_v2 = vpack.c.bf16 %v286_v56, %v286_v56  ;;  %v279_v3 = vmax.f32 %v237_v57, 0.0  ;;  %v287_v4 = vmax.f32 %v269_v58, 0.0 }
 0x129   :  { %v428_v5 = vpack.c.bf16 %v276_v61, %v276_v61  ;;  %v436_v6 = vpack.c.bf16 %v284_v62, %v284_v62  ;;  %v277_v7 = vmax.f32 %v229_v63, 0.0  ;;  %v285_v8 = vmax.f32 %v261_v0, 0.0 }
 0x12a   :  { %359 = vst.msk [vmem:[#allocation8 + $0x18] sm:$0xf] %vm352_vm1, %v430_v1  ;;  %367 = vst.msk [vmem:[#allocation8 + $0x38] sm:$0xf] %vm352_vm1, %v438_v2  ;;  %v431_v9 = vpack.c.bf16 %v279_v3, %v279_v3  ;;  %v439_v10 = vpack.c.bf16 %v287_v4, %v287_v4 }
 0x12b   :  { %357 = vst.msk [vmem:[#allocation8 + $0x10] sm:$0xf] %vm352_vm1, %v428_v5  ;;  %365 = vst.msk [vmem:[#allocation8 + $0x30] sm:$0xf] %vm352_vm1, %v436_v6  ;;  %v429_v11 = vpack.c.bf16 %v277_v7, %v277_v7  ;;  %v437_v12 = vpack.c.bf16 %v285_v8, %v285_v8 }
 0x12c   :  { %360 = vst.msk [vmem:[#allocation8 + $0x1c] sm:$0xf] %vm352_vm1, %v431_v9  ;;  %368 = vst.msk [vmem:[#allocation8 + $0x3c] sm:$0xf] %vm352_vm1, %v439_v10 }
 0x12d   :  { %358 = vst.msk [vmem:[#allocation8 + $0x14] sm:$0xf] %vm352_vm1, %v429_v11  ;;  %366 = vst.msk [vmem:[#allocation8 + $0x34] sm:$0xf] %vm352_vm1, %v437_v12 }
 0x12e   :  { %579 = shalt.err (!%p576_p0)
}
 0x12f   :  { %s580_s28 = scalar_lea.hbm %s713_s3, 1024 }
 0x130   :  { %p581_p1 = scmp.ne.s32.totalorder %s713_s3, %s580_s28  ;;  %p584_p2 = scmp.lt.u32.totalorder %s580_s28, %s713_s3 }
 0x132   :  { %p586_p3 = pnand %p584_p2, %p581_p1 }
 0x134   :  { %589 = shalt.err (!%p586_p3)
}
 0x135   :  { %380 = dma.vmem_to_hbm [thread:$0]  %s375_s22, 1024, %s713_s3, [#allocation4], %s598_s24, %s598_s24, %s599_s25  }
 0x136   :  { %594 = dma.done.wait [#allocation4], 1024  }
 0x137   :  { %595 = vsyncadd [#allocation4], 4294966272 }
 0x138   :  { %384 = vsyncpa [#allocation3], 1 }
 0x139   :  { %385 = vsyncpa [#allocation6], 1 }
 0x13a   :  { %386 = vsyncpa [#allocation4], 1 }

</bundles_post_ra>
